<compile_context>
chip_gen: v7x
topology: tpu7x:2x2x1
jax: 0.10.0
libtpu: 0.0.40
codegen_flags: <defaults>
</compile_context>

<pallas_src>
import jax
import jax.numpy as jnp
from jax.experimental import pallas as pl
from jax.experimental.pallas import tpu as pltpu


def _conv1_proj_kernel(a_ref, x_ref, w1_ref, b1_ref, w2_ref, o_ref, acc_ref):
    """P[rows] = relu( (A[rows,:] @ X) @ W1 + b1 ) @ W2   (bf16 MXU, f32 acc).

    Grid: (row tiles, K tiles of the A/X contraction). acc_ref accumulates
    A[rows, k] @ X[k] in f32; the W1/W2 projection runs once per row tile.
    """
    k = pl.program_id(1)

    @pl.when(k == 0)
    def _():
        acc_ref[...] = jnp.zeros_like(acc_ref)

    # 16-wide O(N^2) contraction (re-associated conv1).
    acc_ref[...] += jnp.dot(a_ref[...], x_ref[...],
                            preferred_element_type=jnp.float32)

    @pl.when(k == pl.num_programs(1) - 1)
    def _():
        h = jnp.dot(acc_ref[...].astype(jnp.bfloat16), w1_ref[...],
                    preferred_element_type=jnp.float32)
        h = jnp.maximum(h + b1_ref[...], 0.0)           # bias + relu in f32
        # TODO(synk): dropout(p=0.3) is identity in eval mode; training-mode
        # mask (pltpu.prng_random_bits) not emitted here.
        # Fold conv2's weight projection so kernel 2 only needs the 32-wide P.
        p = jnp.dot(h.astype(jnp.bfloat16), w2_ref[...],
                    preferred_element_type=jnp.float32)
        o_ref[...] = p.astype(o_ref.dtype)               # bf16 handoff


def _conv2_fc_kernel(a_ref, p_ref, b2_ref, wf_ref, bf_ref, o_ref, acc_ref):
    """out[rows] = sigmoid( relu(A[rows,:] @ P + b2) @ wf + bf ), lane-dense."""
    k = pl.program_id(1)

    @pl.when(k == 0)
    def _():
        acc_ref[...] = jnp.zeros_like(acc_ref)

    # 32-wide O(N^2) contraction (conv2 aggregation).
    acc_ref[...] += jnp.dot(a_ref[...], p_ref[...],
                            preferred_element_type=jnp.float32)

    @pl.when(k == pl.num_programs(1) - 1)
    def _():
        h2 = jnp.maximum(acc_ref[...] + b2_ref[...], 0.0)
        # fc as VPU multiply + XLU lane reduction (1-wide MXU pass is wasted).
        logits = jnp.sum(h2 * wf_ref[...], axis=-1, keepdims=True) + bf_ref[...]
        sig = jax.nn.sigmoid(logits)                     # [tm, 1] f32
        # Lane-dense store: broadcast across 128 lanes, slice [:, :1] outside.
        o_ref[...] = jnp.broadcast_to(sig, o_ref.shape)


def _round_up(x, m):
    return ((x + m - 1) // m) * m


def gnn_forward(a_hat, x, w1, b1, w2, b2, wf, bf, *, tm=128):
    """Forward pass of GNNModel. a_hat: [N,N] f32, x: [N,F_in] f32."""
    n, f_in = x.shape
    h1 = w1.shape[1]                                     # 64
    h2 = w2.shape[1]                                     # 32

    # Pad node count to the row-tile size (fills MXU lanes, keeps blocks legal).
    n_pad = _round_up(max(n, tm), tm)

    # Contraction tile: largest of {1024, 512, 256, 128} dividing n_pad
    # (keeps per-step overhead low for big graphs, single step for small ones).
    tk = tm
    for cand in (1024, 512, 256):
        if n_pad % cand == 0:
            tk = cand
            break

    # bf16 MXU operands; zero-padded rows/cols contribute nothing.
    a_p = jnp.zeros((n_pad, n_pad), jnp.bfloat16).at[:n, :n].set(
        a_hat.astype(jnp.bfloat16))
    x_p = jnp.zeros((n_pad, f_in), jnp.bfloat16).at[:n].set(
        x.astype(jnp.bfloat16))
    w1b = w1.astype(jnp.bfloat16)
    w2b = w2.astype(jnp.bfloat16)
    wf_row = wf.reshape(1, h2).astype(jnp.float32)       # fc weight as row (VPU)

    grid = (n_pad // tm, n_pad // tk)
    cparams = pltpu.CompilerParams(
        dimension_semantics=("parallel", "arbitrary"),   # rows over TCs, K loop
        vmem_limit_bytes=48 * 1024 * 1024,
    )

    # Kernel 1: conv1 (re-associated) + relu + conv2's weight projection.
    p = pl.pallas_call(
        _conv1_proj_kernel,
        out_shape=jax.ShapeDtypeStruct((n_pad, h2), jnp.bfloat16),
        grid=grid,
        in_specs=[
            pl.BlockSpec((tm, tk), lambda i, k: (i, k)),      # A row/K block
            pl.BlockSpec((tk, f_in), lambda i, k: (k, 0)),    # X K block
            pl.BlockSpec((f_in, h1), lambda i, k: (0, 0)),    # W1
            pl.BlockSpec((1, h1), lambda i, k: (0, 0)),       # b1
            pl.BlockSpec((h1, h2), lambda i, k: (0, 0)),      # W2
        ],
        out_specs=pl.BlockSpec((tm, h2), lambda i, k: (i, 0)),
        scratch_shapes=[pltpu.VMEM((tm, f_in), jnp.float32)],
        compiler_params=cparams,
    )(a_p, x_p, w1b, b1, w2b)

    # Kernel 2: conv2 aggregation + relu + fc + sigmoid (lane-dense output).
    out_lanes = pl.pallas_call(
        _conv2_fc_kernel,
        out_shape=jax.ShapeDtypeStruct((n_pad, 128), jnp.float32),
        grid=grid,
        in_specs=[
            pl.BlockSpec((tm, tk), lambda i, k: (i, k)),      # A row/K block
            pl.BlockSpec((tk, h2), lambda i, k: (k, 0)),      # P K block
            pl.BlockSpec((1, h2), lambda i, k: (0, 0)),       # b2
            pl.BlockSpec((1, h2), lambda i, k: (0, 0)),       # wf row
            pl.BlockSpec((1, 1), lambda i, k: (0, 0)),        # bf
        ],
        out_specs=pl.BlockSpec((tm, 128), lambda i, k: (i, 0)),
        scratch_shapes=[pltpu.VMEM((tm, h2), jnp.float32)],
        compiler_params=cparams,
    )(a_p, p, b2, wf_row, bf)

    return out_lanes[:n, :1]


def build_normalized_adjacency(edge_index, num_nodes):
    """Dense equivalent of PyG gcn_norm: A_hat = D^{-1/2} (A + I) D^{-1/2}.
    Uses scatter-add so duplicate edges accumulate (matches PyG's scatter)."""
    src, dst = edge_index[0], edge_index[1]
    a = jnp.zeros((num_nodes, num_nodes), jnp.float32)
    a = a.at[dst, src].add(1.0)                          # message src -> dst
    a = a + jnp.eye(num_nodes, dtype=jnp.float32)        # self loops
    deg = jnp.sum(a, axis=1)                             # in-degree (row = dst)
    d_inv_sqrt = jnp.where(deg > 0, 1.0 / jnp.sqrt(deg), 0.0)
    return d_inv_sqrt[:, None] * a * d_inv_sqrt[None, :]


def glorot(key, shape):
    fan_in, fan_out = shape
    limit = jnp.sqrt(6.0 / (fan_in + fan_out))
    return jax.random.uniform(key, shape, jnp.float32, -limit, limit)


def _reference_forward(a_hat, x, w1, b1, w2, b2, wf, bf):
    h = jnp.maximum(a_hat @ (x @ w1) + b1, 0.0)
    h = jnp.maximum(a_hat @ (h @ w2) + b2, 0.0)
    return jax.nn.sigmoid(h @ wf + bf)


if __name__ == "__main__":
    key = jax.random.PRNGKey(0)
    k_edges, k_x, k_w1, k_w2, k_wf = jax.random.split(key, 5)

    num_nodes = 8
    input_dim = 16
    hidden_dim = 64
    num_edges = 24

    # Deterministic synthetic graph + features.
    src = jax.random.randint(k_edges, (num_edges,), 0, num_nodes)
    dst = jax.random.randint(jax.random.fold_in(k_edges, 1), (num_edges,), 0,
                             num_nodes)
    edge_index = jnp.stack([src, dst], axis=0)            # [2, E]
    x = jax.random.normal(k_x, (num_nodes, input_dim), jnp.float32)

    # Parameters: GCN(in,64), GCN(64,32), Linear(32,1). Biases 2D for VMEM.
    w1 = glorot(k_w1, (input_dim, hidden_dim))
    b1 = jnp.zeros((1, hidden_dim), jnp.float32)
    w2 = glorot(k_w2, (hidden_dim, hidden_dim // 2))
    b2 = jnp.zeros((1, hidden_dim // 2), jnp.float32)
    wf = glorot(k_wf, (hidden_dim // 2, 1))
    bf = jnp.zeros((1, 1), jnp.float32)

    a_hat = build_normalized_adjacency(edge_index, num_nodes)

    out = gnn_forward(a_hat, x, w1, b1, w2, b2, wf, bf)
    out = jax.block_until_ready(out)

    assert out.shape == (num_nodes, 1)
    assert bool(jnp.all((out >= 0.0) & (out <= 1.0)))

    # Loose check vs f32 reference (kernel uses bf16 MXU operands).
    ref = _reference_forward(a_hat, x, w1, b1, w2, b2, wf, bf)
    assert bool(jnp.all(jnp.abs(out - ref) < 5e-2))

    print("KERNEL_OK")
</pallas_src>

<mosaic_0001>
module attributes {stable_mosaic.version = 11 : i64} {
  func.func @_conv1_proj_kernel(%arg0: i32, %arg1: i32, %arg2: memref<128x128xbf16, #tpu.memory_space<vmem>>, %arg3: memref<128x16xbf16, #tpu.memory_space<vmem>>, %arg4: memref<16x64xbf16, #tpu.memory_space<vmem>>, %arg5: memref<1x64xf32, #tpu.memory_space<vmem>>, %arg6: memref<64x32xbf16, #tpu.memory_space<vmem>>, %arg7: memref<128x32xbf16, #tpu.memory_space<vmem>>, %arg8: memref<128x16xf32, #tpu.memory_space<vmem>>) attributes {dimension_semantics = [#tpu.dimension_semantics<parallel>, #tpu.dimension_semantics<arbitrary>], iteration_bounds = array<i64: 1, 1>, scalar_prefetch = 0 : i64, scratch_operands = 1 : i64, tpu.core_type = #tpu.core_type<tc>, window_params = [{transform_indices = @transform_0, window_bounds = array<i64: 128, 128>}, {transform_indices = @transform_1, window_bounds = array<i64: 128, 16>}, {pipeline_mode = #tpu.pipeline_mode<synchronous>, transform_indices = @transform_2, window_bounds = array<i64: 16, 64>}, {pipeline_mode = #tpu.pipeline_mode<synchronous>, transform_indices = @transform_3, window_bounds = array<i64: 1, 64>}, {pipeline_mode = #tpu.pipeline_mode<synchronous>, transform_indices = @transform_4, window_bounds = array<i64: 64, 32>}, {transform_indices = @transform_5, window_bounds = array<i64: 128, 32>}]} {
    %c0_i32 = arith.constant 0 : i32
    %0 = arith.cmpi eq, %arg1, %c0_i32 : i32
    %1 = arith.extui %0 : i1 to i32
    %c0_i32_0 = arith.constant 0 : i32
    %2 = arith.cmpi ne, %1, %c0_i32_0 : i32
    scf.if %2 {
      %cst_10 = arith.constant 0.000000e+00 : f32
      %12 = vector.broadcast %cst_10 : f32 to vector<128x16xf32>
      %c0_11 = arith.constant 0 : index
      %c0_12 = arith.constant 0 : index
      %13 = vector.load %arg8[%c0_11, %c0_12] : memref<128x16xf32, #tpu.memory_space<vmem>>, vector<128x16xf32>
      tpu.vector_store %arg8[%c0_11, %c0_12], %12 {strides = array<i32>} : memref<128x16xf32, #tpu.memory_space<vmem>>, vector<128x16xf32>,
    } else {
    }
    %c0 = arith.constant 0 : index
    %c0_1 = arith.constant 0 : index
    %3 = vector.load %arg8[%c0, %c0_1] : memref<128x16xf32, #tpu.memory_space<vmem>>, vector<128x16xf32>
    %c0_2 = arith.constant 0 : index
    %c0_3 = arith.constant 0 : index
    %4 = vector.load %arg2[%c0_2, %c0_3] : memref<128x128xbf16, #tpu.memory_space<vmem>>, vector<128x128xbf16>
    %c0_4 = arith.constant 0 : index
    %c0_5 = arith.constant 0 : index
    %5 = vector.load %arg3[%c0_4, %c0_5] : memref<128x16xbf16, #tpu.memory_space<vmem>>, vector<128x16xbf16>
    %cst = arith.constant dense<0.000000e+00> : vector<128x16xf32>
    %6 = tpu.matmul %4, %5, %cst {dimension_numbers = #tpu.dot_dimension_numbers<[1], [0], [0], [1], [0, 0, 1, 1], [], []>} : vector<128x128xbf16>, vector<128x16xbf16>, vector<128x16xf32> -> vector<128x16xf32>
    %7 = arith.addf %3, %6 : vector<128x16xf32>
    %c0_6 = arith.constant 0 : index
    %c0_7 = arith.constant 0 : index
    %8 = vector.load %arg8[%c0_6, %c0_7] : memref<128x16xf32, #tpu.memory_space<vmem>>, vector<128x16xf32>
    tpu.vector_store %arg8[%c0_6, %c0_7], %7 {strides = array<i32>} : memref<128x16xf32, #tpu.memory_space<vmem>>, vector<128x16xf32>,
    %c0_i32_8 = arith.constant 0 : i32
    %9 = arith.cmpi eq, %arg1, %c0_i32_8 : i32
    %10 = arith.extui %9 : i1 to i32
    %c0_i32_9 = arith.constant 0 : i32
    %11 = arith.cmpi ne, %10, %c0_i32_9 : i32
    scf.if %11 {
      %c0_10 = arith.constant 0 : index
      %c0_11 = arith.constant 0 : index
      %12 = vector.load %arg8[%c0_10, %c0_11] : memref<128x16xf32, #tpu.memory_space<vmem>>, vector<128x16xf32>
      %13 = arith.truncf %12 : vector<128x16xf32> to vector<128x16xbf16>
      %c0_12 = arith.constant 0 : index
      %c0_13 = arith.constant 0 : index
      %14 = vector.load %arg4[%c0_12, %c0_13] : memref<16x64xbf16, #tpu.memory_space<vmem>>, vector<16x64xbf16>
      %cst_14 = arith.constant dense<0.000000e+00> : vector<128x64xf32>
      %15 = tpu.matmul %13, %14, %cst_14 {dimension_numbers = #tpu.dot_dimension_numbers<[1], [0], [0], [1], [0, 0, 1, 1], [], []>} : vector<128x16xbf16>, vector<16x64xbf16>, vector<128x64xf32> -> vector<128x64xf32>
      %c0_15 = arith.constant 0 : index
      %c0_16 = arith.constant 0 : index
      %16 = vector.load %arg5[%c0_15, %c0_16] : memref<1x64xf32, #tpu.memory_space<vmem>>, vector<1x64xf32>
      %17 = vector.broadcast %16 : vector<1x64xf32> to vector<128x64xf32>
      %18 = arith.addf %15, %17 : vector<128x64xf32>
      %cst_17 = arith.constant 0.000000e+00 : f32
      %19 = vector.broadcast %cst_17 : f32 to vector<128x64xf32>
      %20 = arith.maximumf %18, %19 : vector<128x64xf32>
      %21 = arith.truncf %20 : vector<128x64xf32> to vector<128x64xbf16>
      %c0_18 = arith.constant 0 : index
      %c0_19 = arith.constant 0 : index
      %22 = vector.load %arg6[%c0_18, %c0_19] : memref<64x32xbf16, #tpu.memory_space<vmem>>, vector<64x32xbf16>
      %cst_20 = arith.constant dense<0.000000e+00> : vector<128x32xf32>
      %23 = tpu.matmul %21, %22, %cst_20 {dimension_numbers = #tpu.dot_dimension_numbers<[1], [0], [0], [1], [0, 0, 1, 1], [], []>} : vector<128x64xbf16>, vector<64x32xbf16>, vector<128x32xf32> -> vector<128x32xf32>
      %24 = arith.truncf %23 : vector<128x32xf32> to vector<128x32xbf16>
      %c0_21 = arith.constant 0 : index
      %c0_22 = arith.constant 0 : index
      %25 = vector.load %arg7[%c0_21, %c0_22] : memref<128x32xbf16, #tpu.memory_space<vmem>>, vector<128x32xbf16>
      tpu.vector_store %arg7[%c0_21, %c0_22], %24 {strides = array<i32>} : memref<128x32xbf16, #tpu.memory_space<vmem>>, vector<128x32xbf16>,
    } else {
    }
    return
  }
  func.func @transform_0(%arg0: i32, %arg1: i32) -> (i32, i32) {
    %c0_i32 = arith.constant 0 : i32
    return %arg0, %arg1 : i32, i32
  }
  func.func @transform_1(%arg0: i32, %arg1: i32) -> (i32, i32) {
    %c0_i32 = arith.constant 0 : i32
    %c0_i32_0 = arith.constant 0 : i32
    return %arg1, %c0_i32 : i32, i32
  }
  func.func @transform_2(%arg0: i32, %arg1: i32) -> (i32, i32) {
    %c0_i32 = arith.constant 0 : i32
    %c0_i32_0 = arith.constant 0 : i32
    %c0_i32_1 = arith.constant 0 : i32
    return %c0_i32, %c0_i32_0 : i32, i32
  }
  func.func @transform_3(%arg0: i32, %arg1: i32) -> (i32, i32) {
    %c0_i32 = arith.constant 0 : i32
    %c0_i32_0 = arith.constant 0 : i32
    %c0_i32_1 = arith.constant 0 : i32
    return %c0_i32, %c0_i32_0 : i32, i32
  }
  func.func @transform_4(%arg0: i32, %arg1: i32) -> (i32, i32) {
    %c0_i32 = arith.constant 0 : i32
    %c0_i32_0 = arith.constant 0 : i32
    %c0_i32_1 = arith.constant 0 : i32
    return %c0_i32, %c0_i32_0 : i32, i32
  }
  func.func @transform_5(%arg0: i32, %arg1: i32) -> (i32, i32) {
    %c0_i32 = arith.constant 0 : i32
    %c0_i32_0 = arith.constant 0 : i32
    return %arg0, %c0_i32 : i32, i32
  }
}

</mosaic_0001>

<bundles_post_ra>
// kernel: tpu_custom_call.1
= control target key start
LH: loop header
LB: loop body
LE: loop exit
PB: predicated region body
PF: predicated region fallthrough
CT: control target
= control target key end

     0   :  { %vm25_vm0 = vcmask 130048   ;;  %v945_v1 = vmov 0.0   ;;  %vm535_vm1 = vcmask 523264   ;;  %vm721_vm2 = vcmask 257024   ;;  %s1154_s1 = inlined_call_operand.vmem [shape: bf16[128,16], index: 1, kind: input, shape index: {}]   ;;  %s1155_s0 = inlined_call_operand.vmem [shape: bf16[128,128], index: 0, kind: input, shape index: {}]   ;;  %s1156_s2 = inlined_call_operand.vmem [shape: bf16[16,64], index: 2, kind: input, shape index: {}]   ;;  %s1157_s4 = inlined_call_operand.vmem [shape: bf16[64,32], index: 4, kind: input, shape index: {}]   ;;  %s1158_s3 = inlined_call_operand.vmem [shape: f32[1,64], index: 3, kind: input, shape index: {}]   ;;  %s1159_s5 = inlined_call_operand.vmem [shape: bf16[128,32], index: 5, kind: output, shape index: {}]  }
   0x1   :  { %v924_v0 = vld [vmem:[%s1154_s1] sm:$0xff]   ;;  %28 = vst.msk [vmem:[#allocation2 + $0x10] sm:$0xff] %vm25_vm0, %v945_v1  ;;  %26 = vst.msk [vmem:[#allocation2] sm:$0xff] %vm25_vm0, %v945_v1  ;;  %v925_v2 = vld [vmem:[%s1154_s1 + $0x8] sm:$0xff]  }
   0x2   :  { %27 = vst.msk [vmem:[#allocation2 + $0x8] sm:$0xff] %vm25_vm0, %v945_v1  ;;  %29 = vst.msk [vmem:[#allocation2 + $0x18] sm:$0xff] %vm25_vm0, %v945_v1  ;;  %849 = vmatprep.subr.bf16.mxu0 %v924_v0  ;;  %v926_v3 = vld [vmem:[%s1154_s1 + $0x10] sm:$0xff]   ;;  %v927_v4 = vld [vmem:[%s1154_s1 + $0x18] sm:$0xff]  }
   0x3   :  { %30 = vst.msk [vmem:[#allocation2 + $0x20] sm:$0xff] %vm25_vm0, %v945_v1  ;;  %31 = vst.msk [vmem:[#allocation2 + $0x28] sm:$0xff] %vm25_vm0, %v945_v1  ;;  %850 = vmatpush3.bf16.msra.mxu0 %v924_v0  ;;  %v932_v5 = vld [vmem:[%s1155_s0] sm:$0xff]   ;;  %v929_v7 = vld [vmem:[%s1154_s1 + $0x28] sm:$0xff]  }
   0x4   :  { %32 = vst.msk [vmem:[#allocation2 + $0x30] sm:$0xff] %vm25_vm0, %v945_v1  ;;  %33 = vst.msk [vmem:[#allocation2 + $0x38] sm:$0xff] %vm25_vm0, %v945_v1  ;;  %851 = vmatprep.subr.bf16.mxu0 %v925_v2  ;;  %865 = vmatprep.mubr.bf16.mxu0 %v932_v5  ;;  %v928_v6 = vld [vmem:[%s1154_s1 + $0x20] sm:$0xff]   ;;  %v930_v8 = vld [vmem:[%s1154_s1 + $0x30] sm:$0xff]  }
   0x5   :  { %34 = vst.msk [vmem:[#allocation2 + $0x40] sm:$0xff] %vm25_vm0, %v945_v1  ;;  %35 = vst.msk [vmem:[#allocation2 + $0x48] sm:$0xff] %vm25_vm0, %v945_v1  ;;  %v931_v9 = vld [vmem:[%s1154_s1 + $0x38] sm:$0xff]   ;;  %v933_v10 = vld [vmem:[%s1155_s0 + $0x8] sm:$0xff]  }
   0x6   :  { %36 = vst.msk [vmem:[#allocation2 + $0x50] sm:$0xff] %vm25_vm0, %v945_v1  ;;  %37 = vst.msk [vmem:[#allocation2 + $0x58] sm:$0xff] %vm25_vm0, %v945_v1  ;;  %v934_v11 = vld [vmem:[%s1155_s0 + $0x10] sm:$0xff]   ;;  %v935_v12 = vld [vmem:[%s1155_s0 + $0x18] sm:$0xff]  }
   0x7   :  { %38 = vst.msk [vmem:[#allocation2 + $0x60] sm:$0xff] %vm25_vm0, %v945_v1  ;;  %39 = vst.msk [vmem:[#allocation2 + $0x68] sm:$0xff] %vm25_vm0, %v945_v1  ;;  %852 = vmatpush3.bf16.msra.mxu0 %v925_v2  ;;  %v936_v13 = vld [vmem:[%s1155_s0 + $0x20] sm:$0xff]   ;;  %v937_v14 = vld [vmem:[%s1155_s0 + $0x28] sm:$0xff]  }
   0x8   :  { %40 = vst.msk [vmem:[#allocation2 + $0x70] sm:$0xff] %vm25_vm0, %v945_v1  ;;  %41 = vst.msk [vmem:[#allocation2 + $0x78] sm:$0xff] %vm25_vm0, %v945_v1  ;;  %853 = vmatprep.subr.bf16.mxu0 %v926_v3  ;;  %v938_v15 = vld [vmem:[%s1155_s0 + $0x30] sm:$0xff]   ;;  %v939_v16 = vld [vmem:[%s1155_s0 + $0x38] sm:$0xff]  }
   0x9   :  { %v940_v17 = vld [vmem:[%s1156_s2] sm:$0xff]   ;;  %v44_v19 = vld [vmem:[#allocation2 + $0x10] sm:$0xff]  ;;  %v45_v22 = vld [vmem:[#allocation2 + $0x18] sm:$0xff] }
   0xa   :  { %881 = vmatprep.subr.bf16.mxu1 %v940_v17  ;;  %v941_v18 = vld [vmem:[%s1157_s4] sm:$0xff]   ;;  %v43_v25 = vld [vmem:[#allocation2 + $0x8] sm:$0xff]  ;;  %v943_v61 = vld [vmem:[%s1157_s4 + $0x10] sm:$0xff]  }
   0xb   :  { %854 = vmatpush3.bf16.msra.mxu0 %v926_v3  ;;  %882 = vmatpush3.bf16.msra.mxu1 %v940_v17  ;;  %v42_v20 = vld [vmem:[#allocation2] sm:$0xff]  ;;  %v48_v31 = vld [vmem:[#allocation2 + $0x30] sm:$0xff]  ;;  %v49_v34 = vld [vmem:[#allocation2 + $0x38] sm:$0xff] }
   0xc   :  { %855 = vmatprep.subr.bf16.mxu0 %v927_v4  ;;  %899 = vmatprep.subr.bf16.mxu1 %v941_v18  ;;  %v46_v32 = vld [vmem:[#allocation2 + $0x20] sm:$0xff]  ;;  %v47_v37 = vld [vmem:[#allocation2 + $0x28] sm:$0xff] }
   0xd   :  { %v52_v46 = vld [vmem:[#allocation2 + $0x50] sm:$0xff]  ;;  %v50_v49 = vld [vmem:[#allocation2 + $0x40] sm:$0xff]  ;;  %v942_v51 = vld [vmem:[%s1157_s4 + $0x8] sm:$0xff]  }
   0xe   :  { %v53_v53 = vld [vmem:[#allocation2 + $0x58] sm:$0xff]  ;;  %v51_v56 = vld [vmem:[#allocation2 + $0x48] sm:$0xff]  ;;  %v54_v5 = vld [vmem:[#allocation2 + $0x60] sm:$0xff] }
   0xf   :  { %856 = vmatpush3.bf16.msra.mxu0 %v927_v4  ;;  %v56_v2 = vld [vmem:[#allocation2 + $0x70] sm:$0xff] }
  0x10   :  { %857 = vmatprep.subr.bf16.mxu0 %v928_v6 }
  0x13   :  { %858 = vmatpush3.bf16.msra.mxu0 %v928_v6 }
  0x14   :  { %859 = vmatprep.subr.bf16.mxu0 %v929_v7 }
  0x17   :  { %860 = vmatpush3.bf16.msra.mxu0 %v929_v7 }
  0x18   :  { %861 = vmatprep.subr.bf16.mxu0 %v930_v8 }
  0x1b   :  { %862 = vmatpush3.bf16.msra.mxu0 %v930_v8  ;;  %v57_v8 = vld [vmem:[#allocation2 + $0x78] sm:$0xff] }
  0x1c   :  { %863 = vmatprep.subr.bf16.mxu0 %v931_v9 }
  0x1f   :  { %864 = vmatpush3.bf16.msra.mxu0 %v931_v9 }
  0x22   :  { %866 = vmatmul.mubr.bf16.vlgmr.msra.gmra.mrb[0].mxu0 %v933_v10 }
  0x23   :  { %869 = vmatprep.mubr.bf16.mxu0 %v934_v11  ;;  %v55_v11 = vld [vmem:[#allocation2 + $0x68] sm:$0xff] }
  0x2a   :  { %870 = vmatmul.mubr.bf16.gmra.mrb[4].mxu0 %v935_v12 }
  0x2b   :  { %873 = vmatprep.mubr.bf16.mxu0 %v936_v13 }
  0x32   :  { %874 = vmatmul.mubr.bf16.gmra.mrb[8].mxu0 %v937_v14 }
  0x33   :  { %877 = vmatprep.mubr.bf16.mxu0 %v938_v15 }
  0x3a   :  { %878 = vmatmul.mubr.bf16.gmra.mrb[12].mxu0 %v939_v16 }
  0xf5   :  { %v867_v21 = vpop.f32.mrb[0].mxu0 }
  0xf6   :  { %v285_v23 = vadd.f32 %v867_v21, %v44_v19  ;;  %v220_v24 = vpop.f32.mrb[1].mxu0 }
  0xf7   :  { %v283_v26 = vadd.f32 %v220_v24, %v42_v20  ;;  %v868_v27 = vpop.f32.mrb[2].mxu0 }
  0xf8   :  { %302 = vst.msk [vmem:[#allocation2 + $0x10] sm:$0xff] %vm25_vm0, %v285_v23  ;;  %v286_v28 = vadd.f32 %v868_v27, %v45_v22  ;;  %v223_v29 = vpop.f32.mrb[3].mxu0 }
  0xf9   :  { %300 = vst.msk [vmem:[#allocation2] sm:$0xff] %vm25_vm0, %v283_v26  ;;  %v284_v30 = vadd.f32 %v223_v29, %v43_v25  ;;  %v944_v29 = vld [vmem:[%s1157_s4 + $0x18] sm:$0xff]  }
  0xfa   :  { %303 = vst.msk [vmem:[#allocation2 + $0x18] sm:$0xff] %vm25_vm0, %v286_v28 }
  0xfb   :  { %301 = vst.msk [vmem:[#allocation2 + $0x8] sm:$0xff] %vm25_vm0, %v284_v30  ;;  %v758_v30 = vld [vmem:[%s1158_s3] ss:$0 sm:$0xff] }
  0xfd   :  { %v871_v33 = vpop.f32.mrb[4].mxu0 }
  0xfe   :  { %v289_v35 = vadd.f32 %v871_v33, %v48_v31  ;;  %v236_v36 = vpop.f32.mrb[5].mxu0 }
  0xff   :  { %v287_v38 = vadd.f32 %v236_v36, %v46_v32  ;;  %v872_v39 = vpop.f32.mrb[6].mxu0  ;;  %v321_v48 = vld [vmem:[#allocation2 + $0x10] sm:$0xff] }
 0x100   :  { %306 = vst.msk [vmem:[#allocation2 + $0x30] sm:$0xff] %vm25_vm0, %v289_v35  ;;  %v290_v40 = vadd.f32 %v872_v39, %v49_v34  ;;  %v239_v41 = vpop.f32.mrb[7].mxu0  ;;  %v319_v44 = vld [vmem:[#allocation2] sm:$0xff] }
 0x101   :  { %304 = vst.msk [vmem:[#allocation2 + $0x20] sm:$0xff] %vm25_vm0, %v287_v38  ;;  %v288_v42 = vadd.f32 %v239_v41, %v47_v37  ;;  %v322_v43 = vld [vmem:[#allocation2 + $0x18] sm:$0xff] }
 0x102   :  { %307 = vst.msk [vmem:[#allocation2 + $0x38] sm:$0xff] %vm25_vm0, %v290_v40  ;;  %v320_v45 = vld [vmem:[#allocation2 + $0x8] sm:$0xff]  ;;  %v336_v50 = vpack.c.bf16 %v322_v43, %v321_v48 }
 0x103   :  { %305 = vst.msk [vmem:[#allocation2 + $0x28] sm:$0xff] %vm25_vm0, %v288_v42  ;;  %v335_v47 = vpack.c.bf16 %v320_v45, %v319_v44 }
 0x105   :  { %v875_v52 = vpop.f32.mrb[8].mxu0  ;;  %883 = vmatprep.mubr.msk.bf16.mxu1 %vm25_vm0, %v335_v47 }
 0x106   :  { %v293_v54 = vadd.f32 %v875_v52, %v52_v46  ;;  %v252_v55 = vpop.f32.mrb[9].mxu0  ;;  %884 = vmatmul.mubr.msk.bf16.vlgmr.msra.gmra.mrb[0].mxu1 %vm25_vm0, %v336_v50 }
 0x107   :  { %v291_v57 = vadd.f32 %v252_v55, %v50_v49  ;;  %v876_v58 = vpop.f32.mrb[10].mxu0  ;;  %900 = vmatpush3.bf16.msra.mxu1 %v941_v18  ;;  %v325_v4 = vld [vmem:[#allocation2 + $0x30] sm:$0xff] }
 0x108   :  { %310 = vst.msk [vmem:[#allocation2 + $0x50] sm:$0xff] %vm25_vm0, %v293_v54  ;;  %v294_v59 = vadd.f32 %v876_v58, %v53_v53  ;;  %v255_v60 = vpop.f32.mrb[11].mxu0  ;;  %901 = vmatprep.subr.bf16.mxu1 %v942_v51  ;;  %v323_v0 = vld [vmem:[#allocation2 + $0x20] sm:$0xff] }
 0x109   :  { %308 = vst.msk [vmem:[#allocation2 + $0x40] sm:$0xff] %vm25_vm0, %v291_v57  ;;  %v292_v62 = vadd.f32 %v255_v60, %v51_v56  ;;  %v326_v63 = vld [vmem:[#allocation2 + $0x38] sm:$0xff] }
 0x10a   :  { %311 = vst.msk [vmem:[#allocation2 + $0x58] sm:$0xff] %vm25_vm0, %v294_v59  ;;  %v324_v1 = vld [vmem:[#allocation2 + $0x28] sm:$0xff]  ;;  %v338_v6 = vpack.c.bf16 %v326_v63, %v325_v4 }
 0x10b   :  { %309 = vst.msk [vmem:[#allocation2 + $0x48] sm:$0xff] %vm25_vm0, %v292_v62  ;;  %v337_v3 = vpack.c.bf16 %v324_v1, %v323_v0  ;;  %902 = vmatpush3.bf16.msra.mxu1 %v942_v51 }
 0x10c   :  { %903 = vmatprep.subr.bf16.mxu1 %v943_v61 }
 0x10d   :  { %v879_v7 = vpop.f32.mrb[12].mxu0  ;;  %887 = vmatprep.mubr.msk.bf16.mxu1 %vm25_vm0, %v337_v3 }
 0x10e   :  { %v297_v9 = vadd.f32 %v879_v7, %v56_v2  ;;  %v268_v10 = vpop.f32.mrb[13].mxu0  ;;  %888 = vmatmul.mubr.msk.bf16.gmra.mrb[4].mxu1 %vm25_vm0, %v338_v6 }
 0x10f   :  { %v295_v12 = vadd.f32 %v268_v10, %v54_v5  ;;  %v880_v13 = vpop.f32.mrb[14].mxu0  ;;  %904 = vmatpush3.bf16.msra.mxu1 %v943_v61  ;;  %v329_v21 = vld [vmem:[#allocation2 + $0x50] sm:$0xff] }
 0x110   :  { %314 = vst.msk [vmem:[#allocation2 + $0x70] sm:$0xff] %vm25_vm0, %v297_v9  ;;  %v298_v14 = vadd.f32 %v880_v13, %v57_v8  ;;  %v271_v15 = vpop.f32.mrb[15].mxu0  ;;  %v327_v18 = vld [vmem:[#allocation2 + $0x40] sm:$0xff]  ;;  %905 = vmatprep.subr.bf16.mxu1 %v944_v29 }
 0x111   :  { %312 = vst.msk [vmem:[#allocation2 + $0x60] sm:$0xff] %vm25_vm0, %v295_v12  ;;  %v296_v16 = vadd.f32 %v271_v15, %v55_v11  ;;  %v330_v17 = vld [vmem:[#allocation2 + $0x58] sm:$0xff] }
 0x112   :  { %315 = vst.msk [vmem:[#allocation2 + $0x78] sm:$0xff] %vm25_vm0, %v298_v14  ;;  %v328_v19 = vld [vmem:[#allocation2 + $0x48] sm:$0xff]  ;;  %v340_v22 = vpack.c.bf16 %v330_v17, %v329_v21 }
 0x113   :  { %313 = vst.msk [vmem:[#allocation2 + $0x68] sm:$0xff] %vm25_vm0, %v296_v16  ;;  %v339_v20 = vpack.c.bf16 %v328_v19, %v327_v18  ;;  %906 = vmatpush3.bf16.msra.mxu1 %v944_v29 }
 0x115   :  { %891 = vmatprep.mubr.msk.bf16.mxu1 %vm25_vm0, %v339_v20 }
 0x116   :  { %892 = vmatmul.mubr.msk.bf16.gmra.mrb[8].mxu1 %vm25_vm0, %v340_v22 }
 0x117   :  { %v333_v27 = vld [vmem:[#allocation2 + $0x70] sm:$0xff] }
 0x118   :  { %v331_v24 = vld [vmem:[#allocation2 + $0x60] sm:$0xff] }
 0x119   :  { %v334_v23 = vld [vmem:[#allocation2 + $0x78] sm:$0xff] }
 0x11a   :  { %v332_v25 = vld [vmem:[#allocation2 + $0x68] sm:$0xff]  ;;  %v342_v28 = vpack.c.bf16 %v334_v23, %v333_v27 }
 0x11b   :  { %v341_v26 = vpack.c.bf16 %v332_v25, %v331_v24 }
 0x11d   :  { %895 = vmatprep.mubr.msk.bf16.mxu1 %vm25_vm0, %v341_v26 }
 0x11e   :  { %896 = vmatmul.mubr.msk.bf16.gmra.mrb[12].mxu1 %vm25_vm0, %v342_v28 }
 0x1d9   :  { %v885_v31 = vpop.f32.mrb[0].mxu1 }
 0x1da   :  { %v425_v32 = vadd.f32 %v885_v31, %v758_v30  ;;  %v416_v33 = vpop.f32.mrb[1].mxu1 }
 0x1db   :  { %v417_v34 = vadd.f32 %v758_v30, %v416_v33  ;;  %v886_v35 = vpop.f32.mrb[2].mxu1 }
 0x1dc   :  { %v428_v36 = vadd.f32 %v886_v35, %v758_v30  ;;  %v419_v37 = vpop.f32.mrb[3].mxu1  ;;  %v481_v39 = vmax.f32 %v425_v32, 0.0 }
 0x1dd   :  { %v420_v38 = vadd.f32 %v758_v30, %v419_v37  ;;  %v479_v41 = vmax.f32 %v417_v34, 0.0 }
 0x1de   :  { %v482_v40 = vmax.f32 %v428_v36, 0.0 }
 0x1df   :  { %v480_v42 = vmax.f32 %v420_v38, 0.0 }
 0x1e0   :  { %v496_v43 = vpack.c.bf16 %v482_v40, %v481_v39 }
 0x1e1   :  { %v495_v44 = vpack.c.bf16 %v480_v42, %v479_v41  ;;  %v889_v45 = vpop.f32.mrb[4].mxu1 }
 0x1e2   :  { %v441_v46 = vadd.f32 %v889_v45, %v758_v30  ;;  %v432_v47 = vpop.f32.mrb[5].mxu1 }
 0x1e3   :  { %v433_v48 = vadd.f32 %v758_v30, %v432_v47  ;;  %v890_v49 = vpop.f32.mrb[6].mxu1  ;;  %907 = vmatprep.mubr.msk.bf16.mxu1 %vm535_vm1, %v495_v44 }
 0x1e4   :  { %v444_v50 = vadd.f32 %v890_v49, %v758_v30  ;;  %v435_v51 = vpop.f32.mrb[7].mxu1  ;;  %908 = vmatmul.mubr.msk.bf16.vlgmr.msra.gmra.mrb[16].mxu1 %vm535_vm1, %v496_v43  ;;  %v485_v53 = vmax.f32 %v441_v46, 0.0 }
 0x1e5   :  { %v436_v52 = vadd.f32 %v758_v30, %v435_v51  ;;  %v483_v55 = vmax.f32 %v433_v48, 0.0 }
 0x1e6   :  { %v486_v54 = vmax.f32 %v444_v50, 0.0 }
 0x1e7   :  { %v484_v56 = vmax.f32 %v436_v52, 0.0 }
 0x1e8   :  { %v498_v57 = vpack.c.bf16 %v486_v54, %v485_v53 }
 0x1e9   :  { %v497_v58 = vpack.c.bf16 %v484_v56, %v483_v55  ;;  %v893_v59 = vpop.f32.mrb[8].mxu1 }
 0x1ea   :  { %v457_v60 = vadd.f32 %v893_v59, %v758_v30  ;;  %v448_v61 = vpop.f32.mrb[9].mxu1 }
 0x1eb   :  { %v449_v62 = vadd.f32 %v758_v30, %v448_v61  ;;  %v894_v63 = vpop.f32.mrb[10].mxu1  ;;  %911 = vmatprep.mubr.msk.bf16.mxu1 %vm535_vm1, %v497_v58 }
 0x1ec   :  { %v460_v0 = vadd.f32 %v894_v63, %v758_v30  ;;  %v451_v1 = vpop.f32.mrb[11].mxu1  ;;  %912 = vmatmul.mubr.msk.bf16.gmra.mrb[20].mxu1 %vm535_vm1, %v498_v57  ;;  %v489_v3 = vmax.f32 %v457_v60, 0.0 }
 0x1ed   :  { %v452_v2 = vadd.f32 %v758_v30, %v451_v1  ;;  %v487_v5 = vmax.f32 %v449_v62, 0.0 }
 0x1ee   :  { %v490_v4 = vmax.f32 %v460_v0, 0.0 }
 0x1ef   :  { %v488_v6 = vmax.f32 %v452_v2, 0.0 }
 0x1f0   :  { %v500_v7 = vpack.c.bf16 %v490_v4, %v489_v3 }
 0x1f1   :  { %v499_v8 = vpack.c.bf16 %v488_v6, %v487_v5  ;;  %v897_v9 = vpop.f32.mrb[12].mxu1 }
 0x1f2   :  { %v473_v10 = vadd.f32 %v897_v9, %v758_v30  ;;  %v464_v11 = vpop.f32.mrb[13].mxu1 }
 0x1f3   :  { %v465_v12 = vadd.f32 %v758_v30, %v464_v11  ;;  %v898_v13 = vpop.f32.mrb[14].mxu1  ;;  %915 = vmatprep.mubr.msk.bf16.mxu1 %vm535_vm1, %v499_v8 }
 0x1f4   :  { %v476_v14 = vadd.f32 %v898_v13, %v758_v30  ;;  %v467_v15 = vpop.f32.mrb[15].mxu1  ;;  %916 = vmatmul.mubr.msk.bf16.gmra.mrb[24].mxu1 %vm535_vm1, %v500_v7  ;;  %v493_v17 = vmax.f32 %v473_v10, 0.0 }
 0x1f5   :  { %v468_v16 = vadd.f32 %v758_v30, %v467_v15  ;;  %v491_v19 = vmax.f32 %v465_v12, 0.0 }
 0x1f6   :  { %v494_v18 = vmax.f32 %v476_v14, 0.0 }
 0x1f7   :  { %v492_v20 = vmax.f32 %v468_v16, 0.0 }
 0x1f8   :  { %v502_v21 = vpack.c.bf16 %v494_v18, %v493_v17 }
 0x1f9   :  { %v501_v22 = vpack.c.bf16 %v492_v20, %v491_v19 }
 0x1fb   :  { %919 = vmatprep.mubr.msk.bf16.mxu1 %vm535_vm1, %v501_v22 }
 0x1fc   :  { %920 = vmatmul.mubr.msk.bf16.gmra.mrb[28].mxu1 %vm535_vm1, %v502_v21 }
 0x2b7   :  { %v909_v23 = vpop.f32.mrb[16].mxu1 }
 0x2b8   :  { %v798_v24 = vpack.c.bf16 %v909_v23, %v909_v23  ;;  %v594_v25 = vpop.f32.mrb[17].mxu1 }
 0x2b9   :  { %v796_v26 = vpack.c.bf16 %v594_v25, %v594_v25  ;;  %v910_v27 = vpop.f32.mrb[18].mxu1 }
 0x2ba   :  { %724 = vst.msk [vmem:[%s1159_s5 + $0x8] sm:$0xf] %vm721_vm2, %v798_v24  ;;  %v799_v28 = vpack.c.bf16 %v910_v27, %v910_v27  ;;  %v597_v29 = vpop.f32.mrb[19].mxu1 }
 0x2bb   :  { %722 = vst.msk [vmem:[%s1159_s5] sm:$0xf] %vm721_vm2, %v796_v26  ;;  %v797_v30 = vpack.c.bf16 %v597_v29, %v597_v29 }
 0x2bc   :  { %725 = vst.msk [vmem:[%s1159_s5 + $0xc] sm:$0xf] %vm721_vm2, %v799_v28 }
 0x2bd   :  { %723 = vst.msk [vmem:[%s1159_s5 + $0x4] sm:$0xf] %vm721_vm2, %v797_v30 }
 0x2bf   :  { %v913_v31 = vpop.f32.mrb[20].mxu1 }
 0x2c0   :  { %v802_v32 = vpack.c.bf16 %v913_v31, %v913_v31  ;;  %v610_v33 = vpop.f32.mrb[21].mxu1 }
 0x2c1   :  { %v800_v34 = vpack.c.bf16 %v610_v33, %v610_v33  ;;  %v914_v35 = vpop.f32.mrb[22].mxu1 }
 0x2c2   :  { %728 = vst.msk [vmem:[%s1159_s5 + $0x18] sm:$0xf] %vm721_vm2, %v802_v32  ;;  %v803_v36 = vpack.c.bf16 %v914_v35, %v914_v35  ;;  %v613_v37 = vpop.f32.mrb[23].mxu1 }
 0x2c3   :  { %726 = vst.msk [vmem:[%s1159_s5 + $0x10] sm:$0xf] %vm721_vm2, %v800_v34  ;;  %v801_v38 = vpack.c.bf16 %v613_v37, %v613_v37 }
 0x2c4   :  { %729 = vst.msk [vmem:[%s1159_s5 + $0x1c] sm:$0xf] %vm721_vm2, %v803_v36 }
 0x2c5   :  { %727 = vst.msk [vmem:[%s1159_s5 + $0x14] sm:$0xf] %vm721_vm2, %v801_v38 }
 0x2c7   :  { %v917_v39 = vpop.f32.mrb[24].mxu1 }
 0x2c8   :  { %v806_v40 = vpack.c.bf16 %v917_v39, %v917_v39  ;;  %v626_v41 = vpop.f32.mrb[25].mxu1 }
 0x2c9   :  { %v804_v42 = vpack.c.bf16 %v626_v41, %v626_v41  ;;  %v918_v43 = vpop.f32.mrb[26].mxu1 }
 0x2ca   :  { %732 = vst.msk [vmem:[%s1159_s5 + $0x28] sm:$0xf] %vm721_vm2, %v806_v40  ;;  %v807_v44 = vpack.c.bf16 %v918_v43, %v918_v43  ;;  %v629_v45 = vpop.f32.mrb[27].mxu1 }
 0x2cb   :  { %730 = vst.msk [vmem:[%s1159_s5 + $0x20] sm:$0xf] %vm721_vm2, %v804_v42  ;;  %v805_v46 = vpack.c.bf16 %v629_v45, %v629_v45 }
 0x2cc   :  { %733 = vst.msk [vmem:[%s1159_s5 + $0x2c] sm:$0xf] %vm721_vm2, %v807_v44 }
 0x2cd   :  { %731 = vst.msk [vmem:[%s1159_s5 + $0x24] sm:$0xf] %vm721_vm2, %v805_v46 }
 0x2cf   :  { %v921_v47 = vpop.f32.mrb[28].mxu1 }
 0x2d0   :  { %v810_v48 = vpack.c.bf16 %v921_v47, %v921_v47  ;;  %v642_v49 = vpop.f32.mrb[29].mxu1 }
 0x2d1   :  { %v808_v50 = vpack.c.bf16 %v642_v49, %v642_v49  ;;  %v922_v51 = vpop.f32.mrb[30].mxu1 }
 0x2d2   :  { %736 = vst.msk [vmem:[%s1159_s5 + $0x38] sm:$0xf] %vm721_vm2, %v810_v48  ;;  %v811_v52 = vpack.c.bf16 %v922_v51, %v922_v51  ;;  %v645_v53 = vpop.f32.mrb[31].mxu1 }
 0x2d3   :  { %734 = vst.msk [vmem:[%s1159_s5 + $0x30] sm:$0xf] %vm721_vm2, %v808_v50  ;;  %v809_v54 = vpack.c.bf16 %v645_v53, %v645_v53 }
 0x2d4   :  { %737 = vst.msk [vmem:[%s1159_s5 + $0x3c] sm:$0xf] %vm721_vm2, %v811_v52 }
 0x2d5   :  { %735 = vst.msk [vmem:[%s1159_s5 + $0x34] sm:$0xf] %vm721_vm2, %v809_v54 }

</bundles_post_ra>
